<compile_context>
chip_gen: v6e
topology: v6e:2x2x1
jax: 0.10.0
libtpu: 0.0.40
codegen_flags: <defaults>
</compile_context>

<pallas_src>
import jax
import jax.numpy as jnp
from jax.experimental import pallas as pl
from jax.experimental.pallas import tpu as pltpu

# ---------------- config (small synthetic shapes) ----------------
B, C_IN, H, W = 2, 4, 16, 16          # input: (B, C, H, W), NCHW like PyTorch
K = 3                                  # conv kernel size
FEAT = 32                              # backbone out_feat_dim
HID = 32                               # branch hidden / shared feat-sum dim
NUM_LEVELS = 3                         # hier_info.num_levels
NUM_CLS = (4, 8, 16)                   # hier_info.num_cls_in_level
P = H * W                              # spatial positions per image
CK = C_IN * K * K                      # im2col patch width
HID_ALL = NUM_LEVELS * HID             # 96
HID_PAD = 128                          # lane-dense packed hidden dim
OUT_PAD = 128                          # lane-dense packed logits dim
CLS_OFF = tuple(int(sum(NUM_CLS[:i])) for i in range(NUM_LEVELS))   # (0, 4, 12)
assert sum(NUM_CLS) <= OUT_PAD and HID_ALL <= HID_PAD


# ---------------- glue: im2col (reshape-only, stays in plain JAX) ----------------
def _im2col(x):
    """x: (B, C, H, W) -> patches (B*H*W, C*K*K), flattened as (C, kh, kw)."""
    xp = jnp.pad(x, ((0, 0), (0, 0), (1, 1), (1, 1)))
    taps = []
    for dh in range(K):
        for dw in range(K):
            taps.append(xp[:, :, dh:dh + H, dw:dw + W])       # (B, C, H, W)
    p = jnp.stack(taps, axis=2)                               # (B, C, K*K, H, W)
    p = p.transpose(0, 3, 4, 1, 2).reshape(B, H * W, CK)      # (B, P, C*K*K)
    return p.reshape(B * P, CK)


# ---------------- the fused Pallas kernel ----------------
def _fused_kernel(patches_ref, convwb_ref, w1b_ref, w2b_ref, out_ref):
    # ---- backbone: conv-as-matmul (bias via ones column) -> ReLU -> mean pool ----
    feat_map = jnp.maximum(
        jnp.dot(patches_ref[...], convwb_ref[...],
                preferred_element_type=jnp.float32), 0.0)            # (B*P, FEAT)
    # global average pool: sublane reduction instead of a pooling matmul
    feats = feat_map.reshape(B, P, FEAT).sum(axis=1) * (1.0 / P)      # (B, FEAT)

    # ---- all branch levels as two wide, lane-dense matmuls ----
    w1 = w1b_ref[:FEAT, :]                                            # (FEAT, HID_PAD)
    b1 = w1b_ref[FEAT:FEAT + 1, :]                                    # (1, HID_PAD)
    h_all = jnp.maximum(
        jnp.dot(feats, w1, preferred_element_type=jnp.float32) + b1, 0.0)  # (B, HID_PAD)

    w2 = w2b_ref[:HID_PAD, :]                                         # (HID_PAD, OUT_PAD)
    b2 = w2b_ref[HID_PAD:HID_PAD + 1, :]                              # (1, OUT_PAD)
    # block-lower-triangular W2 encodes: logits_i = (sum_{j<=i} h_j) @ W2_i + b2_i
    out_ref[...] = jnp.dot(h_all, w2, preferred_element_type=jnp.float32) + b2


# ---------------- parameter packing (wrapper-side, plain JAX) ----------------
def _pack_params(params):
    # conv weight + bias stacked; bias row is hit by the ones column of patches_aug
    conv_wb = jnp.concatenate([params["conv_w"], params["conv_b"]], axis=0)  # (CK+1, FEAT)

    w1b = jnp.zeros((FEAT + 1, HID_PAD), jnp.float32)        # rows [0,FEAT)=W1, row FEAT=b1
    w2b = jnp.zeros((HID_PAD + 1, OUT_PAD), jnp.float32)     # rows [0,HID_PAD)=W2_big, last=b2
    for i in range(NUM_LEVELS):
        w1b = w1b.at[:FEAT, i * HID:(i + 1) * HID].set(params[f"w1_{i}"])
        w1b = w1b.at[FEAT, i * HID:(i + 1) * HID].set(params[f"b1_{i}"][0])
        c0, nc = CLS_OFF[i], NUM_CLS[i]
        for j in range(i + 1):   # cumulative feat_sum: level i sees h_0..h_i
            w2b = w2b.at[j * HID:(j + 1) * HID, c0:c0 + nc].set(params[f"w2_{i}"])
        w2b = w2b.at[HID_PAD, c0:c0 + nc].set(params[f"b2_{i}"][0])
    return conv_wb, w1b, w2b


# ---------------- wrapper ----------------
def backbone_branch_ff(x, params):
    patches = _im2col(x)                                               # (B*P, CK)
    ones = jnp.ones((B * P, 1), jnp.float32)
    patches_aug = jnp.concatenate([patches, ones], axis=1)             # (B*P, CK+1)
    conv_wb, w1b, w2b = _pack_params(params)

    vmem = pl.BlockSpec(memory_space=pltpu.MemorySpace.VMEM)
    logits_pad = pl.pallas_call(
        _fused_kernel,
        out_shape=jax.ShapeDtypeStruct((B, OUT_PAD), jnp.float32),
        in_specs=[vmem, vmem, vmem, vmem],
        out_specs=vmem,
    )(patches_aug, conv_wb, w1b, w2b)

    # slice the single lane-dense output into the per-level logits list
    return [logits_pad[:, CLS_OFF[i]:CLS_OFF[i] + NUM_CLS[i]]
            for i in range(NUM_LEVELS)]


# ---------------- pure-JAX reference (for correctness check) ----------------
def reference(x, params):
    patches = _im2col(x)
    fm = jnp.maximum(patches @ params["conv_w"] + params["conv_b"], 0.0)
    feats = fm.reshape(B, P, FEAT).mean(axis=1)
    outs = []
    prev = jnp.zeros((B, HID), jnp.float32)
    for i in range(NUM_LEVELS):
        h = jnp.maximum(feats @ params[f"w1_{i}"] + params[f"b1_{i}"], 0.0)
        s = h + prev
        outs.append(s @ params[f"w2_{i}"] + params[f"b2_{i}"])
        prev = s
    return outs


# ---------------- deterministic parameter init ----------------
def make_params(key):
    keys = jax.random.split(key, 2 + 4 * NUM_LEVELS)
    params = {
        "conv_w": 0.1 * jax.random.normal(keys[0], (CK, FEAT), jnp.float32),
        "conv_b": 0.1 * jax.random.normal(keys[1], (1, FEAT), jnp.float32),
    }
    for i in range(NUM_LEVELS):
        k = keys[2 + 4 * i:6 + 4 * i]
        params[f"w1_{i}"] = 0.1 * jax.random.normal(k[0], (FEAT, HID), jnp.float32)
        params[f"b1_{i}"] = 0.1 * jax.random.normal(k[1], (1, HID), jnp.float32)
        params[f"w2_{i}"] = 0.1 * jax.random.normal(k[2], (HID, NUM_CLS[i]), jnp.float32)
        params[f"b2_{i}"] = 0.1 * jax.random.normal(k[3], (1, NUM_CLS[i]), jnp.float32)
    return params


if __name__ == "__main__":
    key = jax.random.PRNGKey(0)
    kx, kp = jax.random.split(key)
    x = jax.random.normal(kx, (B, C_IN, H, W), jnp.float32)    # NCHW like PyTorch
    params = make_params(kp)

    outs = backbone_branch_ff(x, params)
    outs = jax.block_until_ready(outs)

    refs = reference(x, params)
    for o, r in zip(outs, refs):
        assert o.shape == r.shape
        assert jnp.allclose(o, r, rtol=1e-4, atol=1e-4), "mismatch vs reference"

    print("KERNEL_OK")
</pallas_src>

<mosaic_0001>
module attributes {stable_mosaic.version = 11 : i64} {
  func.func @_fused_kernel(%arg0: memref<512x37xf32, #tpu.memory_space<vmem>>, %arg1: memref<37x32xf32, #tpu.memory_space<vmem>>, %arg2: memref<33x128xf32, #tpu.memory_space<vmem>>, %arg3: memref<129x128xf32, #tpu.memory_space<vmem>>, %arg4: memref<2x128xf32, #tpu.memory_space<vmem>>) attributes {dimension_semantics = [], scalar_prefetch = 0 : i64, scratch_operands = 0 : i64, tpu.core_type = #tpu.core_type<tc>} {
    %c0 = arith.constant 0 : index
    %c0_0 = arith.constant 0 : index
    %0 = vector.load %arg0[%c0, %c0_0] : memref<512x37xf32, #tpu.memory_space<vmem>>, vector<512x37xf32>
    %c0_1 = arith.constant 0 : index
    %c0_2 = arith.constant 0 : index
    %1 = vector.load %arg1[%c0_1, %c0_2] : memref<37x32xf32, #tpu.memory_space<vmem>>, vector<37x32xf32>
    %cst = arith.constant dense<0.000000e+00> : vector<512x32xf32>
    %2 = tpu.matmul %0, %1, %cst {dimension_numbers = #tpu.dot_dimension_numbers<[1], [0], [0], [1], [0, 0, 1, 1], [], []>} : vector<512x37xf32>, vector<37x32xf32>, vector<512x32xf32> -> vector<512x32xf32>
    %cst_3 = arith.constant 0.000000e+00 : f32
    %3 = vector.broadcast %cst_3 : f32 to vector<512x32xf32>
    %4 = arith.maximumf %2, %3 : vector<512x32xf32>
    %5 = vector.shape_cast %4 : vector<512x32xf32> to vector<2x256x32xf32>
    %cst_4 = arith.constant dense<0.000000e+00> : vector<2x32xf32>
    %6 = vector.multi_reduction <add>, %5, %cst_4 [1] : vector<2x256x32xf32> to vector<2x32xf32>
    %cst_5 = arith.constant 3.906250e-03 : f32
    %7 = vector.broadcast %cst_5 : f32 to vector<2x32xf32>
    %8 = arith.mulf %6, %7 : vector<2x32xf32>
    %c0_6 = arith.constant 0 : index
    %c0_7 = arith.constant 0 : index
    %9 = vector.load %arg2[%c0_6, %c0_7] : memref<33x128xf32, #tpu.memory_space<vmem>>, vector<32x128xf32>
    %c32 = arith.constant 32 : index
    %c0_8 = arith.constant 0 : index
    %10 = vector.load %arg2[%c32, %c0_8] : memref<33x128xf32, #tpu.memory_space<vmem>>, vector<1x128xf32>
    %cst_9 = arith.constant dense<0.000000e+00> : vector<2x128xf32>
    %11 = tpu.matmul %8, %9, %cst_9 {dimension_numbers = #tpu.dot_dimension_numbers<[1], [0], [0], [1], [0, 0, 1, 1], [], []>} : vector<2x32xf32>, vector<32x128xf32>, vector<2x128xf32> -> vector<2x128xf32>
    %12 = vector.broadcast %10 : vector<1x128xf32> to vector<2x128xf32>
    %13 = arith.addf %11, %12 : vector<2x128xf32>
    %cst_10 = arith.constant 0.000000e+00 : f32
    %14 = vector.broadcast %cst_10 : f32 to vector<2x128xf32>
    %15 = arith.maximumf %13, %14 : vector<2x128xf32>
    %c0_11 = arith.constant 0 : index
    %c0_12 = arith.constant 0 : index
    %16 = vector.load %arg3[%c0_11, %c0_12] : memref<129x128xf32, #tpu.memory_space<vmem>>, vector<128x128xf32>
    %c128 = arith.constant 128 : index
    %c0_13 = arith.constant 0 : index
    %17 = vector.load %arg3[%c128, %c0_13] : memref<129x128xf32, #tpu.memory_space<vmem>>, vector<1x128xf32>
    %cst_14 = arith.constant dense<0.000000e+00> : vector<2x128xf32>
    %18 = tpu.matmul %15, %16, %cst_14 {dimension_numbers = #tpu.dot_dimension_numbers<[1], [0], [0], [1], [0, 0, 1, 1], [], []>} : vector<2x128xf32>, vector<128x128xf32>, vector<2x128xf32> -> vector<2x128xf32>
    %19 = vector.broadcast %17 : vector<1x128xf32> to vector<2x128xf32>
    %20 = arith.addf %18, %19 : vector<2x128xf32>
    %c0_15 = arith.constant 0 : index
    %c0_16 = arith.constant 0 : index
    %21 = vector.load %arg4[%c0_15, %c0_16] : memref<2x128xf32, #tpu.memory_space<vmem>>, vector<2x128xf32>
    tpu.vector_store %arg4[%c0_15, %c0_16], %20 {strides = array<i32>} : memref<2x128xf32, #tpu.memory_space<vmem>>, vector<2x128xf32>,
    return
  }
}

</mosaic_0001>

<bundles_post_ra>
// kernel: tpu_custom_call.1
= control target key start
LH: loop header
LB: loop body
LE: loop exit
PB: predicated region body
PF: predicated region fallthrough
CT: control target
= control target key end

     0   :  { %vm280_vm0 = vcmask 1044480   ;;  %vm87_vm1 = vcmask 302080   ;;  %s1900_s0 = inlined_call_operand.vmem [shape: f32[512,37], index: 0, kind: input, shape index: {}]   ;;  %s1901_s1 = inlined_call_operand.vmem [shape: f32[37,32], index: 1, kind: input, shape index: {}]   ;;  %s1902_s2 = inlined_call_operand.vmem [shape: f32[33,128], index: 2, kind: input, shape index: {}]   ;;  %s1903_s3 = inlined_call_operand.vmem [shape: f32[129,128], index: 3, kind: input, shape index: {}]   ;;  %s1904_s4 = inlined_call_operand.hbm [shape: f32[2,128], index: 4, kind: output, shape index: {}]  }
   0x1   :  { %v86_v0 = vld [vmem:[%s1901_s1 + $0x20] sm:$0x1f]  ;;  %v85_v1 = vld [vmem:[%s1901_s1 + $0x18] sm:$0xff]  ;;  %v84_v3 = vld [vmem:[%s1901_s1 + $0x10] sm:$0xff] }
   0x2   :  { %1225 = vmatprep.subr.msk.mxu0 %vm280_vm0, %v86_v0  ;;  %v18_v2 = vld [vmem:[%s1900_s0] sm:$0xff]  ;;  %1377 = vmatprep.subr.msk.mxu1 %vm280_vm0, %v86_v0  ;;  %v83_v4 = vld [vmem:[%s1901_s1 + $0x8] sm:$0xff]  ;;  %v20_v7 = vld [vmem:[%s1900_s0 + $0x10] sm:$0xff] }
   0x3   :  { %1226 = vmatpush3.msk.msra.mxu0 %vm280_vm0, %v86_v0  ;;  %1235 = vmatprep.mubr.msk.f32.mxu0 %vm87_vm1, %v18_v2  ;;  %v82_v5 = vld [vmem:[%s1901_s1] sm:$0xff]  ;;  %v19_v6 = vld [vmem:[%s1900_s0 + $0x8] sm:$0xff]  ;;  %v21_v8 = vld [vmem:[%s1900_s0 + $0x18] sm:$0xff] }
   0x4   :  { %1227 = vmatprep.subr.mxu0 %v85_v1  ;;  %1382 = vmatpush3.msk.msra.mxu1 %vm280_vm0, %v86_v0  ;;  %v22_v9 = vld [vmem:[%s1900_s0 + $0x20] sm:$0xff]  ;;  %v60_v10 = vld [vmem:[%s1900_s0 + $0x150] sm:$0xff]  ;;  %v23_v11 = vld [vmem:[%s1900_s0 + $0x28] sm:$0xff] }
   0x5   :  { %1228 = vmatpush3.msra.mxu0 %v85_v1  ;;  %1378 = vmatprep.subr.mxu1 %v85_v1  ;;  %v61_v12 = vld [vmem:[%s1900_s0 + $0x158] sm:$0xff]  ;;  %v62_v13 = vld [vmem:[%s1900_s0 + $0x160] sm:$0xff]  ;;  %v24_v14 = vld [vmem:[%s1900_s0 + $0x30] sm:$0xff] }
   0x6   :  { %1229 = vmatprep.subr.mxu0 %v84_v3  ;;  %1383 = vmatpush3.msra.mxu1 %v85_v1  ;;  %v63_v15 = vld [vmem:[%s1900_s0 + $0x168] sm:$0xff]  ;;  %v64_v16 = vld [vmem:[%s1900_s0 + $0x170] sm:$0xff]  ;;  %v25_v17 = vld [vmem:[%s1900_s0 + $0x38] sm:$0xff] }
   0x7   :  { %1230 = vmatpush3.msra.mxu0 %v84_v3  ;;  %1379 = vmatprep.subr.mxu1 %v84_v3  ;;  %v26_v18 = vld [vmem:[%s1900_s0 + $0x40] sm:$0xff]  ;;  %v65_v19 = vld [vmem:[%s1900_s0 + $0x178] sm:$0xff] }
   0x8   :  { %1231 = vmatprep.subr.mxu0 %v83_v4  ;;  %1384 = vmatpush3.msra.mxu1 %v84_v3  ;;  %v66_v20 = vld [vmem:[%s1900_s0 + $0x180] sm:$0xff] }
   0x9   :  { %1232 = vmatpush3.msra.mxu0 %v83_v4  ;;  %1380 = vmatprep.subr.mxu1 %v83_v4 }
   0xa   :  { %1233 = vmatprep.subr.mxu0 %v82_v5  ;;  %1385 = vmatpush3.msra.mxu1 %v83_v4 }
   0xb   :  { %1234 = vmatpush3.msra.mxu0 %v82_v5  ;;  %1381 = vmatprep.subr.mxu1 %v82_v5 }
   0xc   :  { %1236 = vmatmul.mubr.msk.f32.vlgmr.msra.gmra.mxu0 %vm87_vm1, %v19_v6  ;;  %1386 = vmatpush3.msra.mxu1 %v82_v5 }
   0xd   :  { %1238 = vmatprep.mubr.msk.f32.mxu0 %vm87_vm1, %v20_v7  ;;  %1298 = vmatprep.mubr.msk.f32.mxu1 %vm87_vm1, %v60_v10 }
   0xe   :  { %1299 = vmatmul.mubr.msk.f32.vlgmr.msra.gmra.mxu1 %vm87_vm1, %v61_v12 }
   0xf   :  { %1301 = vmatprep.mubr.msk.f32.mxu1 %vm87_vm1, %v62_v13 }
  0x10   :  { %1239 = vmatmul.mubr.msk.f32.gmra.mxu0 %vm87_vm1, %v21_v8 }
  0x11   :  { %1241 = vmatprep.mubr.msk.f32.mxu0 %vm87_vm1, %v22_v9 }
  0x12   :  { %1302 = vmatmul.mubr.msk.f32.gmra.mxu1 %vm87_vm1, %v63_v15 }
  0x13   :  { %1304 = vmatprep.mubr.msk.f32.mxu1 %vm87_vm1, %v64_v16 }
  0x14   :  { %1242 = vmatmul.mubr.msk.f32.gmra.mxu0 %vm87_vm1, %v23_v11 }
  0x15   :  { %1244 = vmatprep.mubr.msk.f32.mxu0 %vm87_vm1, %v24_v14 }
  0x18   :  { %1245 = vmatmul.mubr.msk.f32.gmra.mxu0 %vm87_vm1, %v25_v17 }
  0x19   :  { %9 = vsyncpa [#allocation3], 0  ;;  %1247 = vmatprep.mubr.msk.f32.mxu0 %vm87_vm1, %v26_v18  ;;  %v27_v21 = vld [vmem:[%s1900_s0 + $0x48] sm:$0xff]  ;;  %v28_v22 = vld [vmem:[%s1900_s0 + $0x50] sm:$0xff]  ;;  %1305 = vmatmul.mubr.msk.f32.gmra.mxu1 %vm87_vm1, %v65_v19  ;;  %v1412_v6 = vmov 0.0   ;;  %vm733_vm2 = vcmask 261120  }
  0x1a   :  { %1307 = vmatprep.mubr.msk.f32.mxu1 %vm87_vm1, %v66_v20  ;;  %v67_v23 = vld [vmem:[%s1900_s0 + $0x188] sm:$0xff]  ;;  %v68_v24 = vld [vmem:[%s1900_s0 + $0x190] sm:$0xff]  ;;  %v29_v25 = vld [vmem:[%s1900_s0 + $0x58] sm:$0xff]  ;;  %1331 = vmatprep.subr.mxu1 %v1412_v6  ;;  %vm1413_vm3 = vmmov 0   ;;  %vm885_vm4 = vcmask 1041409   ;;  %s1414_s6 = smov [#allocation2]  }
  0x1b   :  { %v30_v26 = vld [vmem:[%s1900_s0 + $0x60] sm:$0xff]  ;;  %v69_v27 = vld [vmem:[%s1900_s0 + $0x198] sm:$0xff]  ;;  %v31_v29 = vld [vmem:[%s1900_s0 + $0x68] sm:$0xff]  ;;  %s1058_s7 = sshll.u32 %s1414_s6, 4  ;;  %s1059_s7 = int_to_ptr.vmem [resolvable:$true] %s1058_s7 }
  0x1c   :  { %1248 = vmatmul.mubr.msk.f32.gmra.mxu0 %vm87_vm1, %v27_v21  ;;  %v70_v28 = vld [vmem:[%s1900_s0 + $0x1a0] sm:$0xff]  ;;  %v32_v30 = vld [vmem:[%s1900_s0 + $0x70] sm:$0xff]  ;;  %v71_v31 = vld [vmem:[%s1900_s0 + $0x1a8] sm:$0xff]  ;;  %s1390_s8 = scalar_lea.vmem %s1059_s7, 32  ;;  %p1395_p1 = scmp.lt.s32.totalorder %s1059_s7, %s1059_s7 }
  0x1d   :  { %1250 = vmatprep.mubr.msk.f32.mxu0 %vm87_vm1, %v28_v22  ;;  %1308 = vmatmul.mubr.msk.f32.gmra.mxu1 %vm87_vm1, %v67_v23  ;;  %v72_v32 = vld [vmem:[%s1900_s0 + $0x1b0] sm:$0xff]  ;;  %v33_v33 = vld [vmem:[%s1900_s0 + $0x78] sm:$0xff]  ;;  %v34_v34 = vld [vmem:[%s1900_s0 + $0x80] sm:$0xff]  ;;  %p1391_p0 = scmp.ne.s32.totalorder %s1059_s7, %s1390_s8  ;;  %p1396_p2 = scmp.lt.s32.totalorder %s1390_s8, %s1390_s8 }
  0x1e   :  { %1310 = vmatprep.mubr.msk.f32.mxu1 %vm87_vm1, %v68_v24  ;;  %v73_v35 = vld [vmem:[%s1900_s0 + $0x1b8] sm:$0xff]  ;;  %v74_v36 = vld [vmem:[%s1900_s0 + $0x1c0] sm:$0xff]  ;;  %v35_v37 = vld [vmem:[%s1900_s0 + $0x88] sm:$0xff] }
  0x1f   :  { %v36_v38 = vld [vmem:[%s1900_s0 + $0x90] sm:$0xff]  ;;  %v75_v39 = vld [vmem:[%s1900_s0 + $0x1c8] sm:$0xff]  ;;  %v37_v41 = vld [vmem:[%s1900_s0 + $0x98] sm:$0xff]  ;;  %p1397_p3 = por %p1396_p2, %p1395_p1 }
  0x20   :  { %1251 = vmatmul.mubr.msk.f32.gmra.mxu0 %vm87_vm1, %v29_v25  ;;  %v76_v40 = vld [vmem:[%s1900_s0 + $0x1d0] sm:$0xff]  ;;  %v38_v42 = vld [vmem:[%s1900_s0 + $0xa0] sm:$0xff]  ;;  %v77_v43 = vld [vmem:[%s1900_s0 + $0x1d8] sm:$0xff] }
  0x21   :  { %1253 = vmatprep.mubr.msk.f32.mxu0 %vm87_vm1, %v30_v26  ;;  %1311 = vmatmul.mubr.msk.f32.gmra.mxu1 %vm87_vm1, %v69_v27  ;;  %v78_v44 = vld [vmem:[%s1900_s0 + $0x1e0] sm:$0xff]  ;;  %v39_v45 = vld [vmem:[%s1900_s0 + $0xa8] sm:$0xff]  ;;  %v40_v46 = vld [vmem:[%s1900_s0 + $0xb0] sm:$0xff]  ;;  %p1398_p4 = pnand %p1397_p3, %p1391_p0 }
  0x22   :  { %1313 = vmatprep.mubr.msk.f32.mxu1 %vm87_vm1, %v70_v28  ;;  %v79_v47 = vld [vmem:[%s1900_s0 + $0x1e8] sm:$0xff]  ;;  %v80_v48 = vld [vmem:[%s1900_s0 + $0x1f0] sm:$0xff]  ;;  %v41_v49 = vld [vmem:[%s1900_s0 + $0xb8] sm:$0xff] }
  0x23   :  { %v42_v50 = vld [vmem:[%s1900_s0 + $0xc0] sm:$0xff]  ;;  %v81_v51 = vld [vmem:[%s1900_s0 + $0x1f8] sm:$0xff]  ;;  %v43_v52 = vld [vmem:[%s1900_s0 + $0xc8] sm:$0xff] }
  0x24   :  { %1254 = vmatmul.mubr.msk.f32.gmra.mxu0 %vm87_vm1, %v31_v29  ;;  %v44_v53 = vld [vmem:[%s1900_s0 + $0xd0] sm:$0xff]  ;;  %v45_v54 = vld [vmem:[%s1900_s0 + $0xd8] sm:$0xff]  ;;  %v46_v55 = vld [vmem:[%s1900_s0 + $0xe0] sm:$0xff] }
  0x25   :  { %1256 = vmatprep.mubr.msk.f32.mxu0 %vm87_vm1, %v32_v30  ;;  %1314 = vmatmul.mubr.msk.f32.gmra.mxu1 %vm87_vm1, %v71_v31  ;;  %v47_v56 = vld [vmem:[%s1900_s0 + $0xe8] sm:$0xff]  ;;  %v48_v57 = vld [vmem:[%s1900_s0 + $0xf0] sm:$0xff]  ;;  %v49_v58 = vld [vmem:[%s1900_s0 + $0xf8] sm:$0xff] }
  0x26   :  { %1316 = vmatprep.mubr.msk.f32.mxu1 %vm87_vm1, %v72_v32  ;;  %v50_v59 = vld [vmem:[%s1900_s0 + $0x100] sm:$0xff]  ;;  %v51_v60 = vld [vmem:[%s1900_s0 + $0x108] sm:$0xff]  ;;  %v52_v61 = vld [vmem:[%s1900_s0 + $0x110] sm:$0xff] }
  0x27   :  { %v53_v62 = vld [vmem:[%s1900_s0 + $0x118] sm:$0xff]  ;;  %v54_v63 = vld [vmem:[%s1900_s0 + $0x120] sm:$0xff]  ;;  %v55_v0 = vld [vmem:[%s1900_s0 + $0x128] sm:$0xff] }
  0x28   :  { %1257 = vmatmul.mubr.msk.f32.gmra.mxu0 %vm87_vm1, %v33_v33  ;;  %v56_v1 = vld [vmem:[%s1900_s0 + $0x130] sm:$0xff]  ;;  %v57_v2 = vld [vmem:[%s1900_s0 + $0x138] sm:$0xff]  ;;  %v58_v3 = vld [vmem:[%s1900_s0 + $0x140] sm:$0xff] }
  0x29   :  { %1259 = vmatprep.mubr.msk.f32.mxu0 %vm87_vm1, %v34_v34  ;;  %1317 = vmatmul.mubr.msk.f32.gmra.mxu1 %vm87_vm1, %v73_v35  ;;  %v59_v4 = vld [vmem:[%s1900_s0 + $0x148] sm:$0xff]  ;;  %v877_v5 = vld [vmem:[%s1902_s2 + $0x18] sm:$0xff]  ;;  %v876_v7 = vld [vmem:[%s1902_s2 + $0x10] sm:$0xff] }
  0x2a   :  { %1319 = vmatprep.mubr.msk.f32.mxu1 %vm87_vm1, %v74_v36  ;;  %1332 = vmatpush3.msra.mxu1 %v877_v5 }
  0x2b   :  { %1333 = vmatprep.subr.mxu1 %v1412_v6 }
  0x2c   :  { %1260 = vmatmul.mubr.msk.f32.gmra.mxu0 %vm87_vm1, %v35_v37  ;;  %1334 = vmatpush3.msra.mxu1 %v876_v7  ;;  %v875_v37 = vld [vmem:[%s1902_s2 + $0x8] sm:$0xff] }
  0x2d   :  { %1262 = vmatprep.mubr.msk.f32.mxu0 %vm87_vm1, %v36_v38  ;;  %1320 = vmatmul.mubr.msk.f32.gmra.mxu1 %vm87_vm1, %v75_v39 }
  0x2e   :  { %1322 = vmatprep.mubr.msk.f32.mxu1 %vm87_vm1, %v76_v40  ;;  %1335 = vmatprep.subr.mxu1 %v1412_v6  ;;  %v874_v40 = vld [vmem:[%s1902_s2] sm:$0xff] }
  0x2f   :  { %1336 = vmatpush3.msra.mxu1 %v875_v37 }
  0x30   :  { %1263 = vmatmul.mubr.msk.f32.gmra.mxu0 %vm87_vm1, %v37_v41  ;;  %1337 = vmatprep.subr.mxu1 %v1412_v6 }
  0x31   :  { %1265 = vmatprep.mubr.msk.f32.mxu0 %vm87_vm1, %v38_v42  ;;  %1323 = vmatmul.mubr.msk.f32.gmra.mxu1 %vm87_vm1, %v77_v43 }
  0x32   :  { %1325 = vmatprep.mubr.msk.f32.mxu1 %vm87_vm1, %v78_v44  ;;  %1338 = vmatpush3.msra.mxu1 %v874_v40 }
  0x33   :  { %1342 = vmatprep.subr.mxu1 %v1412_v6 }
  0x34   :  { %1266 = vmatmul.mubr.msk.f32.gmra.mxu0 %vm87_vm1, %v39_v45 }
  0x35   :  { %1268 = vmatprep.mubr.msk.f32.mxu0 %vm87_vm1, %v40_v46  ;;  %1326 = vmatmul.mubr.msk.f32.gmra.mxu1 %vm87_vm1, %v79_v47 }
  0x36   :  { %1328 = vmatprep.mubr.msk.f32.mxu1 %vm87_vm1, %v80_v48 }
  0x38   :  { %1269 = vmatmul.mubr.msk.f32.gmra.mxu0 %vm87_vm1, %v41_v49 }
  0x39   :  { %1271 = vmatprep.mubr.msk.f32.mxu0 %vm87_vm1, %v42_v50  ;;  %1329 = vmatmul.mubr.msk.f32.gmra.mxu1 %vm87_vm1, %v81_v51 }
  0x3a   :  { %1339 = vmatprep.mubr.msk.f32.mxu1 %vm1413_vm3, %v1412_v6 }
  0x3c   :  { %1272 = vmatmul.mubr.msk.f32.gmra.mxu0 %vm87_vm1, %v43_v52 }
  0x3d   :  { %1274 = vmatprep.mubr.msk.f32.mxu0 %vm87_vm1, %v44_v53 }
  0x40   :  { %1275 = vmatmul.mubr.msk.f32.gmra.mxu0 %vm87_vm1, %v45_v54 }
  0x41   :  { %1277 = vmatprep.mubr.msk.f32.mxu0 %vm87_vm1, %v46_v55 }
  0x44   :  { %1278 = vmatmul.mubr.msk.f32.gmra.mxu0 %vm87_vm1, %v47_v56 }
  0x45   :  { %1280 = vmatprep.mubr.msk.f32.mxu0 %vm87_vm1, %v48_v57 }
  0x48   :  { %1281 = vmatmul.mubr.msk.f32.gmra.mxu0 %vm87_vm1, %v49_v58 }
  0x49   :  { %1283 = vmatprep.mubr.msk.f32.mxu0 %vm87_vm1, %v50_v59 }
  0x4c   :  { %1284 = vmatmul.mubr.msk.f32.gmra.mxu0 %vm87_vm1, %v51_v60 }
  0x4d   :  { %1286 = vmatprep.mubr.msk.f32.mxu0 %vm87_vm1, %v52_v61 }
  0x50   :  { %1287 = vmatmul.mubr.msk.f32.gmra.mxu0 %vm87_vm1, %v53_v62 }
  0x51   :  { %1289 = vmatprep.mubr.msk.f32.mxu0 %vm87_vm1, %v54_v63 }
  0x54   :  { %1290 = vmatmul.mubr.msk.f32.gmra.mxu0 %vm87_vm1, %v55_v0 }
  0x55   :  { %1292 = vmatprep.mubr.msk.f32.mxu0 %vm87_vm1, %v56_v1 }
  0x58   :  { %1293 = vmatmul.mubr.msk.f32.gmra.mxu0 %vm87_vm1, %v57_v2 }
  0x59   :  { %1295 = vmatprep.mubr.msk.f32.mxu0 %vm87_vm1, %v58_v3 }
  0x5c   :  { %1296 = vmatmul.mubr.msk.f32.gmra.mxu0 %vm87_vm1, %v59_v4 }
  0xcc   :  { %v1237_v8 = vpop.f32.mrf.mxu0 }
  0xcd   :  { %v670_v9 = vmax.f32 %v1237_v8, 0.0 }
  0xce   :  { %v350_v10 = vpop.f32.mrf.mxu0 }
  0xcf   :  { %v669_v11 = vmax.f32 %v350_v10, 0.0  ;;  %v735_v13 = vsel %vm733_vm2, %v670_v9, 0.0 }
  0xd0   :  { %v1240_v12 = vpop.f32.mrf.mxu0 }
  0xd1   :  { %v734_v14 = vsel %vm733_vm2, %v669_v11, 0.0  ;;  %v672_v17 = vmax.f32 %v1240_v12, 0.0 }
  0xd2   :  { %v736_v15 = vadd.f32 %v735_v13, %v734_v14  ;;  %v360_v16 = vpop.f32.mrf.mxu0 }
  0xd3   :  { %v671_v18 = vmax.f32 %v360_v16, 0.0  ;;  %v739_v23 = vsel %vm733_vm2, %v672_v17, 0.0 }
  0xd4   :  { %v1243_v19 = vpop.f32.mrf.mxu0 }
  0xd5   :  { %v737_v20 = vsel %vm733_vm2, %v671_v18, 0.0  ;;  %v674_v24 = vmax.f32 %v1243_v19, 0.0  ;;  %v1747_v18 = vpop.f32.mrf.mxu1 }
  0xd6   :  { %v738_v21 = vadd.f32 %v737_v20, %v736_v15  ;;  %v370_v22 = vpop.f32.mrf.mxu0 }
  0xd7   :  { %v673_v25 = vmax.f32 %v370_v22, 0.0  ;;  %v743_v31 = vsel %vm733_vm2, %v674_v24, 0.0 }
  0xd8   :  { %v740_v26 = vadd.f32 %v739_v23, %v738_v21  ;;  %v1246_v27 = vpop.f32.mrf.mxu0 }
  0xd9   :  { %v741_v28 = vsel %vm733_vm2, %v673_v25, 0.0  ;;  %v676_v32 = vmax.f32 %v1246_v27, 0.0  ;;  %v1751_v27 = vpop.f32.mrf.mxu1 }
  0xda   :  { %v742_v29 = vadd.f32 %v741_v28, %v740_v26  ;;  %v380_v30 = vpop.f32.mrf.mxu0 }
  0xdb   :  { %v675_v33 = vmax.f32 %v380_v30, 0.0  ;;  %v747_v41 = vsel %vm733_vm2, %v676_v32, 0.0 }
  0xdc   :  { %v744_v34 = vadd.f32 %v743_v31, %v742_v29  ;;  %v1249_v35 = vpop.f32.mrf.mxu0 }
  0xdd   :  { %v745_v36 = vsel %vm733_vm2, %v675_v33, 0.0  ;;  %v678_v42 = vmax.f32 %v1249_v35, 0.0 }
  0xde   :  { %v746_v38 = vadd.f32 %v745_v36, %v744_v34  ;;  %v390_v39 = vpop.f32.mrf.mxu0  ;;  %v1755_v36 = vpop.f32.mrf.mxu1 }
  0xdf   :  { %v677_v43 = vmax.f32 %v390_v39, 0.0  ;;  %v751_v49 = vsel %vm733_vm2, %v678_v42, 0.0 }
  0xe0   :  { %v748_v44 = vadd.f32 %v747_v41, %v746_v38  ;;  %v1252_v45 = vpop.f32.mrf.mxu0 }
  0xe1   :  { %v749_v46 = vsel %vm733_vm2, %v677_v43, 0.0  ;;  %v680_v50 = vmax.f32 %v1252_v45, 0.0  ;;  %v1759_v45 = vpop.f32.mrf.mxu1 }
  0xe2   :  { %v750_v47 = vadd.f32 %v749_v46, %v748_v44  ;;  %v400_v48 = vpop.f32.mrf.mxu0 }
  0xe3   :  { %v679_v51 = vmax.f32 %v400_v48, 0.0  ;;  %v755_v57 = vsel %vm733_vm2, %v680_v50, 0.0 }
  0xe4   :  { %v752_v52 = vadd.f32 %v751_v49, %v750_v47  ;;  %v1255_v53 = vpop.f32.mrf.mxu0 }
  0xe5   :  { %v753_v54 = vsel %vm733_vm2, %v679_v51, 0.0  ;;  %v682_v58 = vmax.f32 %v1255_v53, 0.0 }
  0xe6   :  { %v754_v55 = vadd.f32 %v753_v54, %v752_v52  ;;  %v410_v56 = vpop.f32.mrf.mxu0  ;;  %v1763_v54 = vpop.f32.mrf.mxu1 }
  0xe7   :  { %v681_v59 = vmax.f32 %v410_v56, 0.0  ;;  %v759_v1 = vsel %vm733_vm2, %v682_v58, 0.0 }
  0xe8   :  { %v756_v60 = vadd.f32 %v755_v57, %v754_v55  ;;  %v1258_v61 = vpop.f32.mrf.mxu0 }
  0xe9   :  { %v757_v62 = vsel %vm733_vm2, %v681_v59, 0.0  ;;  %v684_v2 = vmax.f32 %v1258_v61, 0.0 }
  0xea   :  { %v758_v63 = vadd.f32 %v757_v62, %v756_v60  ;;  %v420_v0 = vpop.f32.mrf.mxu0 }
  0xeb   :  { %v683_v3 = vmax.f32 %v420_v0, 0.0  ;;  %v763_v10 = vsel %vm733_vm2, %v684_v2, 0.0 }
  0xec   :  { %v760_v4 = vadd.f32 %v759_v1, %v758_v63  ;;  %v1261_v5 = vpop.f32.mrf.mxu0  ;;  %v1767_v63 = vpop.f32.mrf.mxu1 }
  0xed   :  { %v761_v7 = vsel %vm733_vm2, %v683_v3, 0.0  ;;  %v686_v11 = vmax.f32 %v1261_v5, 0.0 }
  0xee   :  { %v762_v8 = vadd.f32 %v761_v7, %v760_v4  ;;  %v430_v9 = vpop.f32.mrf.mxu0 }
  0xef   :  { %v685_v12 = vmax.f32 %v430_v9, 0.0  ;;  %v767_v19 = vsel %vm733_vm2, %v686_v11, 0.0  ;;  %v1771_v9 = vpop.f32.mrf.mxu1 }
  0xf0   :  { %v764_v13 = vadd.f32 %v763_v10, %v762_v8  ;;  %v1264_v14 = vpop.f32.mrf.mxu0 }
  0xf1   :  { %v765_v15 = vsel %vm733_vm2, %v685_v12, 0.0  ;;  %v688_v20 = vmax.f32 %v1264_v14, 0.0 }
  0xf2   :  { %v766_v16 = vadd.f32 %v765_v15, %v764_v13  ;;  %v440_v17 = vpop.f32.mrf.mxu0 }
  0xf3   :  { %v687_v21 = vmax.f32 %v440_v17, 0.0  ;;  %v771_v28 = vsel %vm733_vm2, %v688_v20, 0.0 }
  0xf4   :  { %v768_v22 = vadd.f32 %v767_v19, %v766_v16  ;;  %v1267_v23 = vpop.f32.mrf.mxu0  ;;  %v1775_v19 = vpop.f32.mrf.mxu1 }
  0xf5   :  { %v769_v24 = vsel %vm733_vm2, %v687_v21, 0.0  ;;  %v690_v29 = vmax.f32 %v1267_v23, 0.0 }
  0xf6   :  { %v770_v25 = vadd.f32 %v769_v24, %v768_v22  ;;  %v450_v26 = vpop.f32.mrf.mxu0 }
  0xf7   :  { %v689_v30 = vmax.f32 %v450_v26, 0.0  ;;  %v775_v37 = vsel %vm733_vm2, %v690_v29, 0.0 }
  0xf8   :  { %v772_v31 = vadd.f32 %v771_v28, %v770_v25  ;;  %v1270_v32 = vpop.f32.mrf.mxu0  ;;  %v1781_v28 = vpop.f32.mrf.mxu1 }
  0xf9   :  { %v773_v33 = vsel %vm733_vm2, %v689_v30, 0.0  ;;  %v692_v38 = vmax.f32 %v1270_v32, 0.0 }
  0xfa   :  { %v774_v34 = vadd.f32 %v773_v33, %v772_v31  ;;  %v460_v35 = vpop.f32.mrf.mxu0 }
  0xfb   :  { %v691_v39 = vmax.f32 %v460_v35, 0.0  ;;  %v779_v46 = vsel %vm733_vm2, %v692_v38, 0.0  ;;  %v600_v38 = vpop.f32.mrf.mxu1 }
  0xfc   :  { %v776_v40 = vadd.f32 %v775_v37, %v774_v34  ;;  %v1273_v41 = vpop.f32.mrf.mxu0 }
  0xfd   :  { %v777_v42 = vsel %vm733_vm2, %v691_v39, 0.0  ;;  %v694_v47 = vmax.f32 %v1273_v41, 0.0 }
  0xfe   :  { %v778_v43 = vadd.f32 %v777_v42, %v776_v40  ;;  %v470_v44 = vpop.f32.mrf.mxu0 }
  0xff   :  { %v693_v48 = vmax.f32 %v470_v44, 0.0  ;;  %v783_v55 = vsel %vm733_vm2, %v694_v47, 0.0 }
 0x100   :  { %v780_v49 = vadd.f32 %v779_v46, %v778_v43  ;;  %v1276_v50 = vpop.f32.mrf.mxu0 }
 0x101   :  { %v781_v51 = vsel %vm733_vm2, %v693_v48, 0.0  ;;  %v696_v56 = vmax.f32 %v1276_v50, 0.0  ;;  %v1315_v48 = vpop.f32.mrf.mxu1 }
 0x102   :  { %v782_v52 = vadd.f32 %v781_v51, %v780_v49  ;;  %v480_v53 = vpop.f32.mrf.mxu0 }
 0x103   :  { %v695_v57 = vmax.f32 %v480_v53, 0.0  ;;  %v787_v0 = vsel %vm733_vm2, %v696_v56, 0.0 }
 0x104   :  { %v784_v58 = vadd.f32 %v783_v55, %v782_v52  ;;  %v1279_v59 = vpop.f32.mrf.mxu0 }
 0x105   :  { %v785_v60 = vsel %vm733_vm2, %v695_v57, 0.0  ;;  %v698_v1 = vmax.f32 %v1279_v59, 0.0 }
 0x106   :  { %v786_v61 = vadd.f32 %v785_v60, %v784_v58  ;;  %v490_v62 = vpop.f32.mrf.mxu0  ;;  %v610_v58 = vpop.f32.mrf.mxu1 }
 0x107   :  { %v697_v2 = vmax.f32 %v490_v62, 0.0  ;;  %v791_v10 = vsel %vm733_vm2, %v698_v1, 0.0  ;;  %v711_v1 = vmax.f32 %v1751_v27, 0.0 }
 0x108   :  { %v788_v3 = vadd.f32 %v787_v0, %v786_v61  ;;  %v1282_v4 = vpop.f32.mrf.mxu0 }
 0x109   :  { %v789_v5 = vsel %vm733_vm2, %v697_v2, 0.0  ;;  %v700_v11 = vmax.f32 %v1282_v4, 0.0 }
 0x10a   :  { %v790_v7 = vadd.f32 %v789_v5, %v788_v3  ;;  %v500_v8 = vpop.f32.mrf.mxu0  ;;  %v1318_v3 = vpop.f32.mrf.mxu1  ;;  %v712_v5 = vmax.f32 %v1747_v18, 0.0 }
 0x10b   :  { %v699_v12 = vmax.f32 %v500_v8, 0.0  ;;  %v795_v20 = vsel %vm733_vm2, %v700_v11, 0.0  ;;  %v822_v8 = vsel %vm733_vm2, %v711_v1, 0.0 }
 0x10c   :  { %v792_v13 = vadd.f32 %v791_v10, %v790_v7  ;;  %v1285_v14 = vpop.f32.mrf.mxu0  ;;  %v713_v10 = vmax.f32 %v1759_v45, 0.0 }
 0x10d   :  { %v793_v15 = vsel %vm733_vm2, %v699_v12, 0.0  ;;  %v702_v21 = vmax.f32 %v1285_v14, 0.0  ;;  %v620_v12 = vpop.f32.mrf.mxu1  ;;  %v714_v14 = vmax.f32 %v1755_v36, 0.0 }
 0x10e   :  { %v794_v16 = vadd.f32 %v793_v15, %v792_v13  ;;  %v510_v17 = vpop.f32.mrf.mxu0  ;;  %v824_v13 = vsel %vm733_vm2, %v712_v5, 0.0  ;;  %v826_v27 = vsel %vm733_vm2, %v713_v10, 0.0 }
 0x10f   :  { %v701_v22 = vmax.f32 %v510_v17, 0.0  ;;  %v804_v29 = vsel %vm733_vm2, %v702_v21, 0.0  ;;  %v828_v18 = vsel %vm733_vm2, %v714_v14, 0.0  ;;  %v716_v21 = vmax.f32 %v1763_v54, 0.0 }
 0x110   :  { %v1778_v23 = vadd.f32 %v795_v20, %v794_v16  ;;  %v1288_v24 = vpop.f32.mrf.mxu0  ;;  %v715_v16 = vmax.f32 %v1767_v63, 0.0  ;;  %v1321_v20 = vpop.f32.mrf.mxu1  ;;  %v720_v54 = vmax.f32 %v1781_v28, 0.0 }
 0x111   :  { %v803_v25 = vsel %vm733_vm2, %v701_v22, 0.0  ;;  %v704_v30 = vmax.f32 %v1288_v24, 0.0  ;;  %v717_v24 = vmax.f32 %v1775_v19, 0.0  ;;  %v832_v36 = vsel %vm733_vm2, %v716_v21, 0.0 }
 0x112   :  { %v520_v26 = vpop.f32.mrf.mxu0  ;;  %v805_v32 = vadd.f32 %v804_v29, %v803_v25  ;;  %v830_v45 = vsel %vm733_vm2, %v715_v16, 0.0  ;;  %v718_v29 = vmax.f32 %v1771_v9, 0.0  ;;  %v721_v19 = vmax.f32 %v610_v58, 0.0 }
 0x113   :  { %v703_v31 = vmax.f32 %v520_v26, 0.0  ;;  %v808_v39 = vsel %vm733_vm2, %v704_v30, 0.0  ;;  %v630_v26 = vpop.f32.mrf.mxu1  ;;  %v834_v63 = vsel %vm733_vm2, %v717_v24, 0.0 }
 0x114   :  { %v1291_v33 = vpop.f32.mrf.mxu0 }
 0x115   :  { %v806_v34 = vsel %vm733_vm2, %v703_v31, 0.0  ;;  %v706_v40 = vmax.f32 %v1291_v33, 0.0  ;;  %v719_v31 = vmax.f32 %v600_v38, 0.0  ;;  %v1324_v33 = vpop.f32.mrf.mxu1 }
 0x116   :  { %v807_v35 = vadd.f32 %v806_v34, %v805_v32  ;;  %v530_v37 = vpop.f32.mrf.mxu0  ;;  %v836_v34 = vsel %vm733_vm2, %v718_v29, 0.0 }
 0x117   :  { %v705_v41 = vmax.f32 %v530_v37, 0.0  ;;  %v812_v49 = vsel %vm733_vm2, %v706_v40, 0.0  ;;  %v838_v37 = vsel %vm733_vm2, %v719_v31, 0.0  ;;  %v640_v40 = vpop.f32.mrf.mxu1 }
 0x118   :  { %v809_v42 = vadd.f32 %v808_v39, %v807_v35  ;;  %v1294_v43 = vpop.f32.mrf.mxu0  ;;  %v727_v58 = vmax.f32 %v640_v40, 0.0  ;;  %v969_v40 = vld [vmem:[%s1903_s3 + $0x48] sm:$0xff] }
 0x119   :  { %v810_v44 = vsel %vm733_vm2, %v705_v41, 0.0  ;;  %v708_v50 = vmax.f32 %v1294_v43, 0.0  ;;  %v840_v41 = vsel %vm733_vm2, %v720_v54, 0.0  ;;  %v842_v43 = vsel %vm733_vm2, %v721_v19, 0.0  ;;  %v974_v54 = vld [vmem:[%s1903_s3 + $0x70] sm:$0xff]  ;;  %v971_v19 = vld [vmem:[%s1903_s3 + $0x58] sm:$0xff] }
 0x11a   :  { %v811_v46 = vadd.f32 %v810_v44, %v809_v42  ;;  %v540_v47 = vpop.f32.mrf.mxu0  ;;  %v722_v42 = vmax.f32 %v1315_v48, 0.0  ;;  %v723_v44 = vmax.f32 %v620_v12, 0.0  ;;  %v854_v1 = vsel %vm733_vm2, %v727_v58, 0.0 }
 0x11b   :  { %v707_v51 = vmax.f32 %v540_v47, 0.0  ;;  %v816_v59 = vsel %vm733_vm2, %v708_v50, 0.0 }
 0x11c   :  { %v813_v52 = vadd.f32 %v812_v49, %v811_v46  ;;  %v1297_v53 = vpop.f32.mrf.mxu0  ;;  %v1327_v46 = vpop.f32.mrf.mxu1  ;;  %v844_v47 = vsel %vm733_vm2, %v722_v42, 0.0  ;;  %v724_v49 = vmax.f32 %v1318_v3, 0.0  ;;  %v846_v28 = vsel %vm733_vm2, %v723_v44, 0.0  ;;  %v967_v42 = vld [vmem:[%s1903_s3 + $0x38] sm:$0xff]  ;;  %v964_v44 = vld [vmem:[%s1903_s3 + $0x20] sm:$0xff] }
 0x11d   :  { %v814_v55 = vsel %vm733_vm2, %v707_v51, 0.0  ;;  %v710_v60 = vmax.f32 %v1297_v53, 0.0  ;;  %v725_v51 = vmax.f32 %v630_v26, 0.0  ;;  %v797_v3 = vrot.slane %v1778_v23, 4 }
 0x11e   :  { %v815_v56 = vadd.f32 %v814_v55, %v813_v52  ;;  %v550_v57 = vpop.f32.mrf.mxu0  ;;  %v650_v53 = vpop.f32.mrf.mxu1  ;;  %v848_v55 = vsel %vm733_vm2, %v724_v49, 0.0  ;;  %v960_v49 = vld [vmem:[%s1903_s3] sm:$0xff] }
 0x11f   :  { %v709_v61 = vmax.f32 %v550_v57, 0.0  ;;  %v820_v4 = vsel %vm733_vm2, %v710_v60, 0.0  ;;  %v850_v48 = vsel %vm733_vm2, %v725_v51, 0.0 }
 0x120   :  { %v817_v62 = vadd.f32 %v816_v59, %v815_v56  ;;  %v726_v56 = vmax.f32 %v1321_v20, 0.0  ;;  %v1330_v60 = vpop.f32.mrf.mxu1 }
 0x121   :  { %v818_v0 = vsel %vm733_vm2, %v709_v61, 0.0 }
 0x122   :  { %v819_v2 = vadd.f32 %v818_v0, %v817_v62  ;;  %v852_v61 = vsel %vm733_vm2, %v726_v56, 0.0  ;;  %v728_v62 = vmax.f32 %v1324_v33, 0.0  ;;  %v660_v5 = vpop.f32.mrf.mxu1  ;;  %v975_v33 = vld [vmem:[%s1903_s3 + $0x78] sm:$0xff] }
 0x123   :  { %v731_v12 = vmax.f32 %v660_v5, 0.0 }
 0x124   :  { %v821_v7 = vadd.f32 %v820_v4, %v819_v2  ;;  %v729_v2 = vmax.f32 %v650_v53, 0.0 }
 0x126   :  { %v823_v11 = vadd.f32 %v822_v8, %v821_v7  ;;  %v856_v7 = vsel %vm733_vm2, %v728_v62, 0.0  ;;  %v730_v8 = vmax.f32 %v1327_v46, 0.0  ;;  %v962_v46 = vld [vmem:[%s1903_s3 + $0x10] sm:$0xff] }
 0x128   :  { %v825_v15 = vadd.f32 %v824_v13, %v823_v11  ;;  %v858_v11 = vsel %vm733_vm2, %v729_v2, 0.0  ;;  %v798_v13 = vadd.f32 %v797_v3, %v1778_v23 }
 0x12a   :  { %v827_v17 = vadd.f32 %v826_v27, %v825_v15  ;;  %v860_v15 = vsel %vm733_vm2, %v730_v8, 0.0  ;;  %v732_v27 = vmax.f32 %v1330_v60, 0.0  ;;  %v799_v20 = vrot.slane %v798_v13, 2 }
 0x12c   :  { %v829_v22 = vadd.f32 %v828_v18, %v827_v17  ;;  %v862_v17 = vsel %vm733_vm2, %v731_v12, 0.0  ;;  %v864_v21 = vsel %vm733_vm2, %v732_v27, 0.0 }
 0x12e   :  { %v831_v25 = vadd.f32 %v830_v45, %v829_v22  ;;  %v800_v45 = vadd.f32 %v799_v20, %v798_v13 }
 0x130   :  { %v833_v30 = vadd.f32 %v832_v36, %v831_v25  ;;  %v801_v26 = vrot.slane %v800_v45, 1 }
 0x132   :  { %v835_v32 = vadd.f32 %v834_v63, %v833_v30  ;;  %v802_v30 = vadd.f32 %v801_v26, %v800_v45 }
 0x134   :  { %v837_v35 = vadd.f32 %v836_v34, %v835_v32  ;;  %v872_v31 = vmul.f32 0.00390625, %v802_v30 }
 0x136   :  { %v839_v39 = vadd.f32 %v838_v37, %v837_v35  ;;  %v973_v35 = vld [vmem:[%s1903_s3 + $0x68] sm:$0xff]  ;;  %v972_v37 = vld [vmem:[%s1903_s3 + $0x60] sm:$0xff] }
 0x138   :  { %v841_v9 = vadd.f32 %v840_v41, %v839_v39  ;;  %v970_v39 = vld [vmem:[%s1903_s3 + $0x50] sm:$0xff]  ;;  %v968_v41 = vld [vmem:[%s1903_s3 + $0x40] sm:$0xff] }
 0x13a   :  { %v843_v38 = vadd.f32 %v842_v43, %v841_v9  ;;  %v966_v9 = vld [vmem:[%s1903_s3 + $0x30] sm:$0xff]  ;;  %v965_v43 = vld [vmem:[%s1903_s3 + $0x28] sm:$0xff] }
 0x13c   :  { %v845_v50 = vadd.f32 %v844_v47, %v843_v38  ;;  %v963_v38 = vld [vmem:[%s1903_s3 + $0x18] sm:$0xff]  ;;  %v961_v47 = vld [vmem:[%s1903_s3 + $0x8] sm:$0xff] }
 0x13e   :  { %v847_v52 = vadd.f32 %v846_v28, %v845_v50  ;;  %v1131_v50 = vld [vmem:[%s1902_s2 + $0x20] ss:$0 sm:$0xff] }
 0x140   :  { %v849_v57 = vadd.f32 %v848_v55, %v847_v52  ;;  %v1133_v55 = vld [vmem:[%s1903_s3 + $0x80] ss:$0 sm:$0xff] }
 0x142   :  { %v851_v59 = vadd.f32 %v850_v48, %v849_v57 }
 0x144   :  { %v853_v0 = vadd.f32 %v852_v61, %v851_v59 }
 0x146   :  { %v855_v4 = vadd.f32 %v854_v1, %v853_v0 }
 0x148   :  { %v857_v10 = vadd.f32 %v856_v7, %v855_v4 }
 0x14a   :  { %v859_v14 = vadd.f32 %v858_v11, %v857_v10 }
 0x14c   :  { %v861_v16 = vadd.f32 %v860_v15, %v859_v14 }
 0x14e   :  { %v863_v18 = vadd.f32 %v862_v17, %v861_v16 }
 0x150   :  { %v865_v22 = vadd.f32 %v864_v21, %v863_v18 }
 0x152   :  { %v866_v24 = vrot.slane %v865_v22, 4 }
 0x154   :  { %v867_v25 = vadd.f32 %v866_v24, %v865_v22 }
 0x156   :  { %v868_v36 = vrot.slane %v867_v25, 2 }
 0x158   :  { %v869_v29 = vadd.f32 %v868_v36, %v867_v25 }
 0x15a   :  { %v870_v23 = vrot.slane %v869_v29, 1 }
 0x15c   :  { %v871_v63 = vadd.f32 %v870_v23, %v869_v29 }
 0x15e   :  { %v873_v32 = vmul.f32 0.00390625, %v871_v63 }
 0x160   :  { %v886_v34 = vsel %vm885_vm4, %v873_v32, %v872_v31 }
 0x161   :  { %1340 = vmatmul.mubr.msk.f32.vlgmr.msra.gmra.mxu1 %vm733_vm2, %v886_v34 }
 0x162   :  { %1343 = vmatpush3.msra.mxu1 %v975_v33  ;;  %1374 = vmatprep.mubr.msk.f32.mxu1 %vm1413_vm3, %v1412_v6 }
 0x163   :  { %1344 = vmatprep.subr.mxu1 %v1412_v6 }
 0x164   :  { %1345 = vmatpush3.msra.mxu1 %v974_v54 }
 0x165   :  { %1346 = vmatprep.subr.mxu1 %v1412_v6 }
 0x166   :  { %1347 = vmatpush3.msra.mxu1 %v973_v35 }
 0x167   :  { %1348 = vmatprep.subr.mxu1 %v1412_v6 }
 0x168   :  { %1349 = vmatpush3.msra.mxu1 %v972_v37 }
 0x169   :  { %1350 = vmatprep.subr.mxu1 %v1412_v6 }
 0x16a   :  { %1351 = vmatpush3.msra.mxu1 %v971_v19 }
 0x16b   :  { %1352 = vmatprep.subr.mxu1 %v1412_v6 }
 0x16c   :  { %1353 = vmatpush3.msra.mxu1 %v970_v39 }
 0x16d   :  { %1354 = vmatprep.subr.mxu1 %v1412_v6 }
 0x16e   :  { %1355 = vmatpush3.msra.mxu1 %v969_v40 }
 0x16f   :  { %1356 = vmatprep.subr.mxu1 %v1412_v6 }
 0x170   :  { %1357 = vmatpush3.msra.mxu1 %v968_v41 }
 0x171   :  { %1358 = vmatprep.subr.mxu1 %v1412_v6 }
 0x172   :  { %1359 = vmatpush3.msra.mxu1 %v967_v42 }
 0x173   :  { %1360 = vmatprep.subr.mxu1 %v1412_v6 }
 0x174   :  { %1361 = vmatpush3.msra.mxu1 %v966_v9 }
 0x175   :  { %1362 = vmatprep.subr.mxu1 %v1412_v6 }
 0x176   :  { %1363 = vmatpush3.msra.mxu1 %v965_v43 }
 0x177   :  { %1364 = vmatprep.subr.mxu1 %v1412_v6 }
 0x178   :  { %1365 = vmatpush3.msra.mxu1 %v964_v44 }
 0x179   :  { %1366 = vmatprep.subr.mxu1 %v1412_v6 }
 0x17a   :  { %1367 = vmatpush3.msra.mxu1 %v963_v38 }
 0x17b   :  { %1368 = vmatprep.subr.mxu1 %v1412_v6 }
 0x17c   :  { %1369 = vmatpush3.msra.mxu1 %v962_v46 }
 0x17d   :  { %1370 = vmatprep.subr.mxu1 %v1412_v6 }
 0x17e   :  { %1371 = vmatpush3.msra.mxu1 %v961_v47 }
 0x17f   :  { %1372 = vmatprep.subr.mxu1 %v1412_v6 }
 0x180   :  { %1373 = vmatpush3.msra.mxu1 %v960_v49 }
 0x221   :  { %v955_v28 = vpop.f32.mrf.mxu1 }
 0x222   :  { %v956_v51 = vadd.f32 %v1131_v50, %v955_v28 }
 0x223   :  { %v1341_v52 = vpop.f32.mrf.mxu1 }
 0x224   :  { %v959_v53 = vmax.f32 %v956_v51, 0.0 }
 0x226   :  { %1375 = vmatmul.mubr.f32.vlgmr.msra.gmra.mxu1 %v959_v53 }
 0x2e6   :  { %v1047_v6 = vpop.f32.mrf.mxu1 }
 0x2e7   :  { %v1048_v56 = vadd.f32 %v1133_v55, %v1047_v6 }
 0x2e8   :  { %v1376_v57 = vpop.f32.mrf.mxu1 }
 0x2e9   :  { %1051 = vst [vmem:[#allocation2] sm:$0x3] %v1048_v56 }
 0x2ea   :  { %1401 = shalt.err (!%p1398_p4)
}
 0x2eb   :  { %1061 = dma.vmem_to_hbm [thread:$0]  %s1059_s7, 32, %s1904_s4, [#allocation3]  }
 0x2ec   :  { %1410 = dma.done.wait [#allocation3], 32  }
 0x2ed   :  { %1411 = vsyncadd [#allocation3], 4294967264 }
 0x2ee   :  { %1065 = vsyncpa [#allocation3], 1 }

</bundles_post_ra>
